<compile_context>
chip_gen: v6e
topology: v6e:2x2x1
jax: 0.10.0
libtpu: 0.0.40
codegen_flags: <defaults>
</compile_context>

<pallas_src>
import math
from functools import partial

import jax
import jax.numpy as jnp
from jax.experimental import pallas as pl
from jax.experimental.pallas import tpu as pltpu

NEG_SLOPE = 0.01      # LeakyReLU slope used by Coder
NUM_ACTIONS = 5       # linear_head output size
OUT_PAD = 128         # lane-dense padded output width
TB = 8                # batch-tile rows (sublane granularity)


# ------------------------- fused forward kernel ------------------------------
def _actor_kernel(obs_ref, w1_ref, b1_ref, w2_ref, b2_ref, cls_ref,
                  wqkv_ref, bqkv_ref, wo_ref, bo_ref, wh_ref, bh_ref,
                  out_ref, *, nseg, D, H, tb):
    f32 = jnp.float32
    S = nseg + 1                      # cls token + one token per segment
    R = S * tb                        # token rows in seq-major layout (row = s*tb + b)
    dh = D // H
    scale = 1.0 / math.sqrt(dh)

    # ---- all Coders as two block-diagonal matmuls -----------------------------
    x = obs_ref[...]                                                     # (tb, obs_dim)
    h = jnp.dot(x, w1_ref[...], preferred_element_type=f32) + b1_ref[...]
    h = jnp.where(h >= 0, h, NEG_SLOPE * h)                              # LeakyReLU(0.01)
    c = jnp.dot(h, w2_ref[...], preferred_element_type=f32) + b2_ref[...]  # (tb, nseg*D)

    # ---- assemble tokens, seq-major: [cls rows ; seg0 rows ; ... ; seg3 rows] -
    pieces = [jnp.broadcast_to(cls_ref[...], (tb, D))]
    for i in range(nseg):
        pieces.append(c[:, i * D:(i + 1) * D])
    f2 = jnp.concatenate(pieces, axis=0)                                 # (R, D)

    # ---- fused q/k/v projection (single matmul) + relu ------------------------
    qkv = jnp.dot(f2, wqkv_ref[...], preferred_element_type=f32) + bqkv_ref[...]
    qkv = jnp.maximum(qkv, 0.0)                                          # (R, 3D)
    q_cls = qkv[0:tb, 0:D]          # only cls-token queries are ever read
    k = qkv[:, D:2 * D]
    v = qkv[:, 2 * D:3 * D]

    # additive mask: cls query of batch-lane b only attends to keys of batch-lane b
    qrow = jax.lax.broadcasted_iota(jnp.int32, (tb, R), 0)
    kcol = jax.lax.broadcasted_iota(jnp.int32, (tb, R), 1)
    attn_bias = jnp.where((kcol & (tb - 1)) == qrow, 0.0, -1e9).astype(f32)

    lane = jax.lax.broadcasted_iota(jnp.int32, (1, D), 1)

    # ---- per-head scaled-dot-product attention (cls queries only) -------------
    y = jnp.zeros((tb, D), f32)
    for hh in range(H):
        lo = hh * dh
        qh = q_cls[:, lo:lo + dh]                                        # (tb, dh)
        kh = k[:, lo:lo + dh]                                            # (R, dh)
        s = jnp.einsum('qd,kd->qk', qh, kh,
                       preferred_element_type=f32) * scale + attn_bias   # (tb, R)
        # scores are bounded (post-relu inputs, std-0.1 weights): skip max-subtraction
        e = jnp.exp(s)
        a = e * pl.reciprocal(jnp.sum(e, axis=-1, keepdims=True), approx=True)
        vh = jnp.where((lane >= lo) & (lane < lo + dh), v, 0.0)          # head-h lanes of v
        y = y + jnp.dot(a, vh, preferred_element_type=f32)               # accumulate heads

    # ---- output linear + relu, then padded 5-way head -------------------------
    yo = jnp.maximum(
        jnp.dot(y, wo_ref[...], preferred_element_type=f32) + bo_ref[...], 0.0)
    out = jnp.dot(yo, wh_ref[...], preferred_element_type=f32) + bh_ref[...]
    out_ref[...] = out.astype(out_ref.dtype)                             # (tb, 128) dense


def fused_forward(obs_pad, pk, *, nseg, D, H):
    Bp, obs_dim = obs_pad.shape
    assert Bp % TB == 0
    grid = (Bp // TB,)
    batch_map = lambda i: (i, 0)
    const_map = lambda i: (0, 0)      # weights resident in VMEM across batch tiles

    weight_names = ('w1bd', 'b1', 'w2bd', 'b2', 'cls',
                    'wqkv', 'bqkv', 'wo', 'bo', 'wh', 'bh')
    in_specs = [pl.BlockSpec((TB, obs_dim), batch_map)]
    in_specs += [pl.BlockSpec(pk[n].shape, const_map) for n in weight_names]

    return pl.pallas_call(
        partial(_actor_kernel, nseg=nseg, D=D, H=H, tb=TB),
        grid=grid,
        in_specs=in_specs,
        out_specs=pl.BlockSpec((TB, OUT_PAD), batch_map),
        out_shape=jax.ShapeDtypeStruct((Bp, OUT_PAD), jnp.float32),
        compiler_params=pltpu.CompilerParams(dimension_semantics=("parallel",)),
    )(obs_pad, *(pk[n] for n in weight_names))


# ------------------------------ parameter init -------------------------------
def init_params(key, obs_size, features_n):
    n_keys = 4 * len(obs_size) + 11
    ks = iter(jax.random.split(key, n_keys))

    def nrm(shape, std=0.1):
        return std * jax.random.normal(next(ks), shape, jnp.float32)

    def bias(shape, fan_in):
        bound = 1.0 / math.sqrt(fan_in)
        return jax.random.uniform(next(ks), shape, jnp.float32, -bound, bound)

    coders = []
    for (s, e) in obs_size:
        d_in = e - s
        hid = max(d_in, features_n)          # max(input_shape, output_shape)
        coders.append(dict(
            w1t=nrm((hid, d_in)).T, b1=bias((hid,), d_in),
            w2t=nrm((features_n, hid)).T, b2=bias((features_n,), hid)))

    D = features_n
    return dict(
        coders=coders,
        cls_token=nrm((1, 1, D), std=1.0),   # torch.randn, requires_grad=False
        wq_t=nrm((D, D)).T, bq=bias((D,), D),
        wk_t=nrm((D, D)).T, bk=bias((D,), D),
        wv_t=nrm((D, D)).T, bv=bias((D,), D),
        wo_t=nrm((D, D)).T, bo=bias((D,), D),
        wh_t=nrm((NUM_ACTIONS, D)).T, bh=bias((NUM_ACTIONS,), D),
    )


def pack_params(raw, obs_size, features_n, obs_dim):
    """One-time packing of per-layer torch-style weights into fused kernel slabs."""
    D = features_n
    nseg = len(obs_size)
    hids = [max(e - s, D) for (s, e) in obs_size]
    TH = sum(hids)

    w1bd = jnp.zeros((obs_dim, TH), jnp.float32)       # block-diagonal first linears
    w2bd = jnp.zeros((TH, nseg * D), jnp.float32)      # block-diagonal second linears
    b1_parts, b2_parts = [], []
    off = 0
    for i, ((s, e), hid) in enumerate(zip(obs_size, hids)):
        cd = raw['coders'][i]
        w1bd = w1bd.at[s:e, off:off + hid].set(cd['w1t'])
        w2bd = w2bd.at[off:off + hid, i * D:(i + 1) * D].set(cd['w2t'])
        b1_parts.append(cd['b1'])
        b2_parts.append(cd['b2'])
        off += hid

    wqkv = jnp.concatenate([raw['wq_t'], raw['wk_t'], raw['wv_t']], axis=1)   # (D, 3D)
    bqkv = jnp.concatenate([raw['bq'], raw['bk'], raw['bv']])[None, :]        # (1, 3D)
    wh = jnp.zeros((D, OUT_PAD), jnp.float32).at[:, :NUM_ACTIONS].set(raw['wh_t'])
    bh = jnp.zeros((1, OUT_PAD), jnp.float32).at[0, :NUM_ACTIONS].set(raw['bh'])

    return dict(
        w1bd=w1bd, b1=jnp.concatenate(b1_parts)[None, :],
        w2bd=w2bd, b2=jnp.concatenate(b2_parts)[None, :],
        cls=raw['cls_token'].reshape(1, D),
        wqkv=wqkv, bqkv=bqkv,
        wo=raw['wo_t'], bo=raw['bo'][None, :],
        wh=wh, bh=bh,
    )


# ------------------------------ full forward ---------------------------------
def actor_attention_forward(obs_input, packed, obs_size, features_n, head_num,
                            gumbel_key, model_original_out=False):
    if obs_input.ndim == 1:
        obs_input = obs_input[None, :]
    B = obs_input.shape[0]
    obs_dim = packed['w1bd'].shape[0]
    Bp = ((B + TB - 1) // TB) * TB                     # pad batch to sublane multiple
    obs_pad = jnp.zeros((Bp, obs_dim), jnp.float32).at[:B, :].set(
        obs_input[:, :obs_dim].astype(jnp.float32))

    out_pad = fused_forward(obs_pad, packed,
                            nseg=len(obs_size), D=features_n, H=head_num)
    model_out = out_pad[:B, :NUM_ACTIONS]              # (B, 5)
    if model_out.shape[0] == 1:                        # torch .squeeze(0)
        model_out = model_out[0]

    # Gumbel-softmax sampling (torch.rand_like): random draw stays in plain JAX.
    u = jax.random.uniform(gumbel_key, model_out.shape, jnp.float32,
                           minval=1e-6, maxval=1.0)
    policy = jax.nn.softmax(model_out - jnp.log(-jnp.log(u)), axis=-1)
    if model_original_out:
        return model_out, policy
    return policy


# -------------------- pure-JAX reference (for validation) --------------------
def reference_model_out(obs_input, params, obs_size, features_n, head_num):
    if obs_input.ndim == 1:
        obs_input = obs_input[None, :]
    segs = []
    for i, (s, e) in enumerate(obs_size):
        p = params['coders'][i]
        h = obs_input[:, s:e] @ p['w1t'] + p['b1']
        h = jnp.where(h >= 0, h, NEG_SLOPE * h)
        segs.append(h @ p['w2t'] + p['b2'])
    f = jnp.concatenate(segs, axis=1).reshape(-1, len(obs_size), features_n)
    B = f.shape[0]
    f = jnp.concatenate(
        [jnp.broadcast_to(params['cls_token'], (B, 1, features_n)), f], axis=1)
    D, H = features_n, head_num
    S, dh = f.shape[1], D // head_num
    relu = jax.nn.relu
    q = relu(f @ params['wq_t'] + params['bq'])
    k = relu(f @ params['wk_t'] + params['bk'])
    v = relu(f @ params['wv_t'] + params['bv'])

    def to_b(x):
        return x.reshape(B, S, H, dh).transpose(0, 2, 1, 3).reshape(B * H, S, dh)

    q, k, v = to_b(q), to_b(k), to_b(v)
    scores = q @ jnp.swapaxes(k, -2, -1) / math.sqrt(dh)
    attn = jax.nn.softmax(scores, axis=-1)
    y = (attn @ v).reshape(B, H, S, dh).transpose(0, 2, 1, 3).reshape(B, S, D)
    y = relu(y @ params['wo_t'] + params['bo'])
    out = y[:, 0] @ params['wh_t'] + params['bh']
    if out.shape[0] == 1:
        out = out[0]
    return out


if __name__ == "__main__":
    features_n = 32                                    # args.actor_features_num
    head_num = 4                                       # args.head_num
    obs_size = [(0, 6), (6, 16), (16, 28), (28, 32)]   # args.actor_obs_size (ragged)
    B = 2

    key = jax.random.PRNGKey(0)
    pkey, xkey, gkey = jax.random.split(key, 3)
    raw_params = init_params(pkey, obs_size, features_n)
    obs_dim = max(e for _, e in obs_size)
    packed = pack_params(raw_params, obs_size, features_n, obs_dim)
    obs = jax.random.normal(xkey, (B, obs_dim), jnp.float32)

    model_out, policy = actor_attention_forward(
        obs, packed, obs_size, features_n, head_num, gkey, model_original_out=True)
    jax.block_until_ready(policy)

    ref = reference_model_out(obs, raw_params, obs_size, features_n, head_num)
    assert model_out.shape == (B, NUM_ACTIONS)
    assert policy.shape == (B, NUM_ACTIONS)
    assert jnp.allclose(model_out, ref, rtol=1e-2, atol=1e-2), (model_out, ref)
    assert jnp.allclose(policy.sum(-1), 1.0, atol=1e-5)
    print("KERNEL_OK")
</pallas_src>

<mosaic_0001>
module attributes {stable_mosaic.version = 11 : i64} {
  func.func @_actor_kernel(%arg0: i32, %arg1: memref<8x32xf32, #tpu.memory_space<vmem>>, %arg2: memref<32x128xf32, #tpu.memory_space<vmem>>, %arg3: memref<1x128xf32, #tpu.memory_space<vmem>>, %arg4: memref<128x128xf32, #tpu.memory_space<vmem>>, %arg5: memref<1x128xf32, #tpu.memory_space<vmem>>, %arg6: memref<1x32xf32, #tpu.memory_space<vmem>>, %arg7: memref<32x96xf32, #tpu.memory_space<vmem>>, %arg8: memref<1x96xf32, #tpu.memory_space<vmem>>, %arg9: memref<32x32xf32, #tpu.memory_space<vmem>>, %arg10: memref<1x32xf32, #tpu.memory_space<vmem>>, %arg11: memref<32x128xf32, #tpu.memory_space<vmem>>, %arg12: memref<1x128xf32, #tpu.memory_space<vmem>>, %arg13: memref<8x128xf32, #tpu.memory_space<vmem>>) attributes {dimension_semantics = [#tpu.dimension_semantics<parallel>], iteration_bounds = array<i64: 1>, scalar_prefetch = 0 : i64, scratch_operands = 0 : i64, tpu.core_type = #tpu.core_type<tc>, window_params = [{transform_indices = @transform_0, window_bounds = array<i64: 8, 32>}, {pipeline_mode = #tpu.pipeline_mode<synchronous>, transform_indices = @transform_1, window_bounds = array<i64: 32, 128>}, {pipeline_mode = #tpu.pipeline_mode<synchronous>, transform_indices = @transform_2, window_bounds = array<i64: 1, 128>}, {pipeline_mode = #tpu.pipeline_mode<synchronous>, transform_indices = @transform_3, window_bounds = array<i64: 128, 128>}, {pipeline_mode = #tpu.pipeline_mode<synchronous>, transform_indices = @transform_4, window_bounds = array<i64: 1, 128>}, {pipeline_mode = #tpu.pipeline_mode<synchronous>, transform_indices = @transform_5, window_bounds = array<i64: 1, 32>}, {pipeline_mode = #tpu.pipeline_mode<synchronous>, transform_indices = @transform_6, window_bounds = array<i64: 32, 96>}, {pipeline_mode = #tpu.pipeline_mode<synchronous>, transform_indices = @transform_7, window_bounds = array<i64: 1, 96>}, {pipeline_mode = #tpu.pipeline_mode<synchronous>, transform_indices = @transform_8, window_bounds = array<i64: 32, 32>}, {pipeline_mode = #tpu.pipeline_mode<synchronous>, transform_indices = @transform_9, window_bounds = array<i64: 1, 32>}, {pipeline_mode = #tpu.pipeline_mode<synchronous>, transform_indices = @transform_10, window_bounds = array<i64: 32, 128>}, {pipeline_mode = #tpu.pipeline_mode<synchronous>, transform_indices = @transform_11, window_bounds = array<i64: 1, 128>}, {transform_indices = @transform_12, window_bounds = array<i64: 8, 128>}]} {
    %c0 = arith.constant 0 : index
    %c0_0 = arith.constant 0 : index
    %0 = vector.load %arg1[%c0, %c0_0] : memref<8x32xf32, #tpu.memory_space<vmem>>, vector<8x32xf32>
    %c0_1 = arith.constant 0 : index
    %c0_2 = arith.constant 0 : index
    %1 = vector.load %arg2[%c0_1, %c0_2] : memref<32x128xf32, #tpu.memory_space<vmem>>, vector<32x128xf32>
    %cst = arith.constant dense<0.000000e+00> : vector<8x128xf32>
    %2 = tpu.matmul %0, %1, %cst {dimension_numbers = #tpu.dot_dimension_numbers<[1], [0], [0], [1], [0, 0, 1, 1], [], []>} : vector<8x32xf32>, vector<32x128xf32>, vector<8x128xf32> -> vector<8x128xf32>
    %c0_3 = arith.constant 0 : index
    %c0_4 = arith.constant 0 : index
    %3 = vector.load %arg3[%c0_3, %c0_4] : memref<1x128xf32, #tpu.memory_space<vmem>>, vector<1x128xf32>
    %4 = vector.broadcast %3 : vector<1x128xf32> to vector<8x128xf32>
    %5 = arith.addf %2, %4 : vector<8x128xf32>
    %cst_5 = arith.constant 0.000000e+00 : f32
    %6 = vector.broadcast %cst_5 : f32 to vector<8x128xf32>
    %7 = arith.cmpf oge, %5, %6 : vector<8x128xf32>
    %cst_6 = arith.constant 0.00999999977 : f32
    %8 = vector.broadcast %cst_6 : f32 to vector<8x128xf32>
    %9 = arith.mulf %8, %5 : vector<8x128xf32>
    %10 = arith.select %7, %5, %9 : vector<8x128xi1>, vector<8x128xf32>
    %c0_7 = arith.constant 0 : index
    %c0_8 = arith.constant 0 : index
    %11 = vector.load %arg4[%c0_7, %c0_8] : memref<128x128xf32, #tpu.memory_space<vmem>>, vector<128x128xf32>
    %cst_9 = arith.constant dense<0.000000e+00> : vector<8x128xf32>
    %12 = tpu.matmul %10, %11, %cst_9 {dimension_numbers = #tpu.dot_dimension_numbers<[1], [0], [0], [1], [0, 0, 1, 1], [], []>} : vector<8x128xf32>, vector<128x128xf32>, vector<8x128xf32> -> vector<8x128xf32>
    %c0_10 = arith.constant 0 : index
    %c0_11 = arith.constant 0 : index
    %13 = vector.load %arg5[%c0_10, %c0_11] : memref<1x128xf32, #tpu.memory_space<vmem>>, vector<1x128xf32>
    %14 = vector.broadcast %13 : vector<1x128xf32> to vector<8x128xf32>
    %15 = arith.addf %12, %14 : vector<8x128xf32>
    %c0_12 = arith.constant 0 : index
    %c0_13 = arith.constant 0 : index
    %16 = vector.load %arg6[%c0_12, %c0_13] : memref<1x32xf32, #tpu.memory_space<vmem>>, vector<1x32xf32>
    %17 = vector.shape_cast %16 : vector<1x32xf32> to vector<1x32xf32>
    %18 = vector.broadcast %17 : vector<1x32xf32> to vector<8x32xf32>
    %19 = vector.extract_strided_slice %15 {offsets = [0, 0], sizes = [8, 32], strides = [1, 1]} : vector<8x128xf32> to vector<8x32xf32>
    %20 = vector.extract_strided_slice %15 {offsets = [0, 32], sizes = [8, 32], strides = [1, 1]} : vector<8x128xf32> to vector<8x32xf32>
    %21 = vector.extract_strided_slice %15 {offsets = [0, 64], sizes = [8, 32], strides = [1, 1]} : vector<8x128xf32> to vector<8x32xf32>
    %22 = vector.extract_strided_slice %15 {offsets = [0, 96], sizes = [8, 32], strides = [1, 1]} : vector<8x128xf32> to vector<8x32xf32>
    %23 = tpu.concatenate %18, %19, %20, %21, %22 in 0 : vector<8x32xf32>, vector<8x32xf32>, vector<8x32xf32>, vector<8x32xf32>, vector<8x32xf32> -> vector<40x32xf32>
    %c0_14 = arith.constant 0 : index
    %c0_15 = arith.constant 0 : index
    %24 = vector.load %arg7[%c0_14, %c0_15] : memref<32x96xf32, #tpu.memory_space<vmem>>, vector<32x96xf32>
    %cst_16 = arith.constant dense<0.000000e+00> : vector<40x96xf32>
    %25 = tpu.matmul %23, %24, %cst_16 {dimension_numbers = #tpu.dot_dimension_numbers<[1], [0], [0], [1], [0, 0, 1, 1], [], []>} : vector<40x32xf32>, vector<32x96xf32>, vector<40x96xf32> -> vector<40x96xf32>
    %c0_17 = arith.constant 0 : index
    %c0_18 = arith.constant 0 : index
    %26 = vector.load %arg8[%c0_17, %c0_18] : memref<1x96xf32, #tpu.memory_space<vmem>>, vector<1x96xf32>
    %27 = vector.broadcast %26 : vector<1x96xf32> to vector<40x96xf32>
    %28 = arith.addf %25, %27 : vector<40x96xf32>
    %cst_19 = arith.constant 0.000000e+00 : f32
    %29 = vector.broadcast %cst_19 : f32 to vector<40x96xf32>
    %30 = arith.maximumf %28, %29 : vector<40x96xf32>
    %31 = vector.extract_strided_slice %30 {offsets = [0, 0], sizes = [8, 32], strides = [1, 1]} : vector<40x96xf32> to vector<8x32xf32>
    %32 = vector.extract_strided_slice %30 {offsets = [0, 32], sizes = [40, 32], strides = [1, 1]} : vector<40x96xf32> to vector<40x32xf32>
    %33 = vector.extract_strided_slice %30 {offsets = [0, 64], sizes = [40, 32], strides = [1, 1]} : vector<40x96xf32> to vector<40x32xf32>
    %34 = tpu.iota {dimensions = array<i32: 0>} : vector<8x40xi32>
    %35 = tpu.iota {dimensions = array<i32: 1>} : vector<8x40xi32>
    %c7_i32 = arith.constant 7 : i32
    %36 = vector.broadcast %c7_i32 : i32 to vector<8x40xi32>
    %37 = arith.andi %35, %36 : vector<8x40xi32>
    %38 = arith.cmpi eq, %37, %34 : vector<8x40xi32>
    %cst_20 = arith.constant 0.000000e+00 : f32
    %cst_21 = arith.constant -1.000000e+09 : f32
    %39 = vector.broadcast %cst_20 : f32 to vector<8x40xf32>
    %40 = vector.broadcast %cst_21 : f32 to vector<8x40xf32>
    %41 = arith.select %38, %39, %40 : vector<8x40xi1>, vector<8x40xf32>
    %42 = tpu.iota {dimensions = array<i32: 1>} : vector<1x32xi32>
    %cst_22 = arith.constant 0.000000e+00 : f32
    %43 = vector.broadcast %cst_22 : f32 to vector<8x32xf32>
    %44 = vector.extract_strided_slice %31 {offsets = [0, 0], sizes = [8, 8], strides = [1, 1]} : vector<8x32xf32> to vector<8x8xf32>
    %45 = vector.extract_strided_slice %32 {offsets = [0, 0], sizes = [40, 8], strides = [1, 1]} : vector<40x32xf32> to vector<40x8xf32>
    "tpu.trace_start"() <{level = 10 : i32, message = "qd,kd->qk"}> : () -> ()
    %cst_23 = arith.constant dense<0.000000e+00> : vector<8x40xf32>
    %46 = tpu.matmul %44, %45, %cst_23 {dimension_numbers = #tpu.dot_dimension_numbers<[1], [1], [0], [0], [0, 0, 1, 0], [], []>} : vector<8x8xf32>, vector<40x8xf32>, vector<8x40xf32> -> vector<8x40xf32>
    "tpu.trace_stop"() : () -> ()
    %cst_24 = arith.constant 0.353553385 : f32
    %47 = vector.broadcast %cst_24 : f32 to vector<8x40xf32>
    %48 = arith.mulf %46, %47 : vector<8x40xf32>
    %49 = arith.addf %48, %41 : vector<8x40xf32>
    %50 = math.exp %49 : vector<8x40xf32>
    %cst_25 = arith.constant dense<0.000000e+00> : vector<8xf32>
    %51 = vector.multi_reduction <add>, %50, %cst_25 [1] : vector<8x40xf32> to vector<8xf32>
    %52 = vector.shape_cast %51 : vector<8xf32> to vector<8x1xf32>
    %53 = tpu.reciprocal %52 {approx = true} : vector<8x1xf32> -> vector<8x1xf32>
    %54 = vector.broadcast %53 : vector<8x1xf32> to vector<8x40xf32>
    %55 = arith.mulf %50, %54 : vector<8x40xf32>
    %c0_i32 = arith.constant 0 : i32
    %56 = vector.broadcast %c0_i32 : i32 to vector<1x32xi32>
    %57 = arith.cmpi sge, %42, %56 : vector<1x32xi32>
    %c8_i32 = arith.constant 8 : i32
    %58 = vector.broadcast %c8_i32 : i32 to vector<1x32xi32>
    %59 = arith.cmpi slt, %42, %58 : vector<1x32xi32>
    %60 = arith.andi %57, %59 : vector<1x32xi1>
    %cst_26 = arith.constant 0.000000e+00 : f32
    %61 = vector.shape_cast %60 : vector<1x32xi1> to vector<1x32xi1>
    %62 = vector.broadcast %61 : vector<1x32xi1> to vector<40x32xi1>
    %63 = vector.broadcast %cst_26 : f32 to vector<40x32xf32>
    %64 = arith.select %62, %33, %63 : vector<40x32xi1>, vector<40x32xf32>
    %cst_27 = arith.constant dense<0.000000e+00> : vector<8x32xf32>
    %65 = tpu.matmul %55, %64, %cst_27 {dimension_numbers = #tpu.dot_dimension_numbers<[1], [0], [0], [1], [0, 0, 1, 1], [], []>} : vector<8x40xf32>, vector<40x32xf32>, vector<8x32xf32> -> vector<8x32xf32>
    %66 = arith.addf %43, %65 : vector<8x32xf32>
    %67 = vector.extract_strided_slice %31 {offsets = [0, 8], sizes = [8, 8], strides = [1, 1]} : vector<8x32xf32> to vector<8x8xf32>
    %68 = vector.extract_strided_slice %32 {offsets = [0, 8], sizes = [40, 8], strides = [1, 1]} : vector<40x32xf32> to vector<40x8xf32>
    "tpu.trace_start"() <{level = 10 : i32, message = "qd,kd->qk"}> : () -> ()
    %cst_28 = arith.constant dense<0.000000e+00> : vector<8x40xf32>
    %69 = tpu.matmul %67, %68, %cst_28 {dimension_numbers = #tpu.dot_dimension_numbers<[1], [1], [0], [0], [0, 0, 1, 0], [], []>} : vector<8x8xf32>, vector<40x8xf32>, vector<8x40xf32> -> vector<8x40xf32>
    "tpu.trace_stop"() : () -> ()
    %cst_29 = arith.constant 0.353553385 : f32
    %70 = vector.broadcast %cst_29 : f32 to vector<8x40xf32>
    %71 = arith.mulf %69, %70 : vector<8x40xf32>
    %72 = arith.addf %71, %41 : vector<8x40xf32>
    %73 = math.exp %72 : vector<8x40xf32>
    %cst_30 = arith.constant dense<0.000000e+00> : vector<8xf32>
    %74 = vector.multi_reduction <add>, %73, %cst_30 [1] : vector<8x40xf32> to vector<8xf32>
    %75 = vector.shape_cast %74 : vector<8xf32> to vector<8x1xf32>
    %76 = tpu.reciprocal %75 {approx = true} : vector<8x1xf32> -> vector<8x1xf32>
    %77 = vector.broadcast %76 : vector<8x1xf32> to vector<8x40xf32>
    %78 = arith.mulf %73, %77 : vector<8x40xf32>
    %c8_i32_31 = arith.constant 8 : i32
    %79 = vector.broadcast %c8_i32_31 : i32 to vector<1x32xi32>
    %80 = arith.cmpi sge, %42, %79 : vector<1x32xi32>
    %c16_i32 = arith.constant 16 : i32
    %81 = vector.broadcast %c16_i32 : i32 to vector<1x32xi32>
    %82 = arith.cmpi slt, %42, %81 : vector<1x32xi32>
    %83 = arith.andi %80, %82 : vector<1x32xi1>
    %cst_32 = arith.constant 0.000000e+00 : f32
    %84 = vector.shape_cast %83 : vector<1x32xi1> to vector<1x32xi1>
    %85 = vector.broadcast %84 : vector<1x32xi1> to vector<40x32xi1>
    %86 = vector.broadcast %cst_32 : f32 to vector<40x32xf32>
    %87 = arith.select %85, %33, %86 : vector<40x32xi1>, vector<40x32xf32>
    %cst_33 = arith.constant dense<0.000000e+00> : vector<8x32xf32>
    %88 = tpu.matmul %78, %87, %cst_33 {dimension_numbers = #tpu.dot_dimension_numbers<[1], [0], [0], [1], [0, 0, 1, 1], [], []>} : vector<8x40xf32>, vector<40x32xf32>, vector<8x32xf32> -> vector<8x32xf32>
    %89 = arith.addf %66, %88 : vector<8x32xf32>
    %90 = vector.extract_strided_slice %31 {offsets = [0, 16], sizes = [8, 8], strides = [1, 1]} : vector<8x32xf32> to vector<8x8xf32>
    %91 = vector.extract_strided_slice %32 {offsets = [0, 16], sizes = [40, 8], strides = [1, 1]} : vector<40x32xf32> to vector<40x8xf32>
    "tpu.trace_start"() <{level = 10 : i32, message = "qd,kd->qk"}> : () -> ()
    %cst_34 = arith.constant dense<0.000000e+00> : vector<8x40xf32>
    %92 = tpu.matmul %90, %91, %cst_34 {dimension_numbers = #tpu.dot_dimension_numbers<[1], [1], [0], [0], [0, 0, 1, 0], [], []>} : vector<8x8xf32>, vector<40x8xf32>, vector<8x40xf32> -> vector<8x40xf32>
    "tpu.trace_stop"() : () -> ()
    %cst_35 = arith.constant 0.353553385 : f32
    %93 = vector.broadcast %cst_35 : f32 to vector<8x40xf32>
    %94 = arith.mulf %92, %93 : vector<8x40xf32>
    %95 = arith.addf %94, %41 : vector<8x40xf32>
    %96 = math.exp %95 : vector<8x40xf32>
    %cst_36 = arith.constant dense<0.000000e+00> : vector<8xf32>
    %97 = vector.multi_reduction <add>, %96, %cst_36 [1] : vector<8x40xf32> to vector<8xf32>
    %98 = vector.shape_cast %97 : vector<8xf32> to vector<8x1xf32>
    %99 = tpu.reciprocal %98 {approx = true} : vector<8x1xf32> -> vector<8x1xf32>
    %100 = vector.broadcast %99 : vector<8x1xf32> to vector<8x40xf32>
    %101 = arith.mulf %96, %100 : vector<8x40xf32>
    %c16_i32_37 = arith.constant 16 : i32
    %102 = vector.broadcast %c16_i32_37 : i32 to vector<1x32xi32>
    %103 = arith.cmpi sge, %42, %102 : vector<1x32xi32>
    %c24_i32 = arith.constant 24 : i32
    %104 = vector.broadcast %c24_i32 : i32 to vector<1x32xi32>
    %105 = arith.cmpi slt, %42, %104 : vector<1x32xi32>
    %106 = arith.andi %103, %105 : vector<1x32xi1>
    %cst_38 = arith.constant 0.000000e+00 : f32
    %107 = vector.shape_cast %106 : vector<1x32xi1> to vector<1x32xi1>
    %108 = vector.broadcast %107 : vector<1x32xi1> to vector<40x32xi1>
    %109 = vector.broadcast %cst_38 : f32 to vector<40x32xf32>
    %110 = arith.select %108, %33, %109 : vector<40x32xi1>, vector<40x32xf32>
    %cst_39 = arith.constant dense<0.000000e+00> : vector<8x32xf32>
    %111 = tpu.matmul %101, %110, %cst_39 {dimension_numbers = #tpu.dot_dimension_numbers<[1], [0], [0], [1], [0, 0, 1, 1], [], []>} : vector<8x40xf32>, vector<40x32xf32>, vector<8x32xf32> -> vector<8x32xf32>
    %112 = arith.addf %89, %111 : vector<8x32xf32>
    %113 = vector.extract_strided_slice %31 {offsets = [0, 24], sizes = [8, 8], strides = [1, 1]} : vector<8x32xf32> to vector<8x8xf32>
    %114 = vector.extract_strided_slice %32 {offsets = [0, 24], sizes = [40, 8], strides = [1, 1]} : vector<40x32xf32> to vector<40x8xf32>
    "tpu.trace_start"() <{level = 10 : i32, message = "qd,kd->qk"}> : () -> ()
    %cst_40 = arith.constant dense<0.000000e+00> : vector<8x40xf32>
    %115 = tpu.matmul %113, %114, %cst_40 {dimension_numbers = #tpu.dot_dimension_numbers<[1], [1], [0], [0], [0, 0, 1, 0], [], []>} : vector<8x8xf32>, vector<40x8xf32>, vector<8x40xf32> -> vector<8x40xf32>
    "tpu.trace_stop"() : () -> ()
    %cst_41 = arith.constant 0.353553385 : f32
    %116 = vector.broadcast %cst_41 : f32 to vector<8x40xf32>
    %117 = arith.mulf %115, %116 : vector<8x40xf32>
    %118 = arith.addf %117, %41 : vector<8x40xf32>
    %119 = math.exp %118 : vector<8x40xf32>
    %cst_42 = arith.constant dense<0.000000e+00> : vector<8xf32>
    %120 = vector.multi_reduction <add>, %119, %cst_42 [1] : vector<8x40xf32> to vector<8xf32>
    %121 = vector.shape_cast %120 : vector<8xf32> to vector<8x1xf32>
    %122 = tpu.reciprocal %121 {approx = true} : vector<8x1xf32> -> vector<8x1xf32>
    %123 = vector.broadcast %122 : vector<8x1xf32> to vector<8x40xf32>
    %124 = arith.mulf %119, %123 : vector<8x40xf32>
    %c24_i32_43 = arith.constant 24 : i32
    %125 = vector.broadcast %c24_i32_43 : i32 to vector<1x32xi32>
    %126 = arith.cmpi sge, %42, %125 : vector<1x32xi32>
    %c32_i32 = arith.constant 32 : i32
    %127 = vector.broadcast %c32_i32 : i32 to vector<1x32xi32>
    %128 = arith.cmpi slt, %42, %127 : vector<1x32xi32>
    %129 = arith.andi %126, %128 : vector<1x32xi1>
    %cst_44 = arith.constant 0.000000e+00 : f32
    %130 = vector.shape_cast %129 : vector<1x32xi1> to vector<1x32xi1>
    %131 = vector.broadcast %130 : vector<1x32xi1> to vector<40x32xi1>
    %132 = vector.broadcast %cst_44 : f32 to vector<40x32xf32>
    %133 = arith.select %131, %33, %132 : vector<40x32xi1>, vector<40x32xf32>
    %cst_45 = arith.constant dense<0.000000e+00> : vector<8x32xf32>
    %134 = tpu.matmul %124, %133, %cst_45 {dimension_numbers = #tpu.dot_dimension_numbers<[1], [0], [0], [1], [0, 0, 1, 1], [], []>} : vector<8x40xf32>, vector<40x32xf32>, vector<8x32xf32> -> vector<8x32xf32>
    %135 = arith.addf %112, %134 : vector<8x32xf32>
    %c0_46 = arith.constant 0 : index
    %c0_47 = arith.constant 0 : index
    %136 = vector.load %arg9[%c0_46, %c0_47] : memref<32x32xf32, #tpu.memory_space<vmem>>, vector<32x32xf32>
    %cst_48 = arith.constant dense<0.000000e+00> : vector<8x32xf32>
    %137 = tpu.matmul %135, %136, %cst_48 {dimension_numbers = #tpu.dot_dimension_numbers<[1], [0], [0], [1], [0, 0, 1, 1], [], []>} : vector<8x32xf32>, vector<32x32xf32>, vector<8x32xf32> -> vector<8x32xf32>
    %c0_49 = arith.constant 0 : index
    %c0_50 = arith.constant 0 : index
    %138 = vector.load %arg10[%c0_49, %c0_50] : memref<1x32xf32, #tpu.memory_space<vmem>>, vector<1x32xf32>
    %139 = vector.broadcast %138 : vector<1x32xf32> to vector<8x32xf32>
    %140 = arith.addf %137, %139 : vector<8x32xf32>
    %cst_51 = arith.constant 0.000000e+00 : f32
    %141 = vector.broadcast %cst_51 : f32 to vector<8x32xf32>
    %142 = arith.maximumf %140, %141 : vector<8x32xf32>
    %c0_52 = arith.constant 0 : index
    %c0_53 = arith.constant 0 : index
    %143 = vector.load %arg11[%c0_52, %c0_53] : memref<32x128xf32, #tpu.memory_space<vmem>>, vector<32x128xf32>
    %cst_54 = arith.constant dense<0.000000e+00> : vector<8x128xf32>
    %144 = tpu.matmul %142, %143, %cst_54 {dimension_numbers = #tpu.dot_dimension_numbers<[1], [0], [0], [1], [0, 0, 1, 1], [], []>} : vector<8x32xf32>, vector<32x128xf32>, vector<8x128xf32> -> vector<8x128xf32>
    %c0_55 = arith.constant 0 : index
    %c0_56 = arith.constant 0 : index
    %145 = vector.load %arg12[%c0_55, %c0_56] : memref<1x128xf32, #tpu.memory_space<vmem>>, vector<1x128xf32>
    %146 = vector.broadcast %145 : vector<1x128xf32> to vector<8x128xf32>
    %147 = arith.addf %144, %146 : vector<8x128xf32>
    %c0_57 = arith.constant 0 : index
    %c0_58 = arith.constant 0 : index
    %148 = vector.load %arg13[%c0_57, %c0_58] : memref<8x128xf32, #tpu.memory_space<vmem>>, vector<8x128xf32>
    tpu.vector_store %arg13[%c0_57, %c0_58], %147 {strides = array<i32>} : memref<8x128xf32, #tpu.memory_space<vmem>>, vector<8x128xf32>,
    return
  }
  func.func @transform_0(%arg0: i32) -> (i32, i32) {
    %c0_i32 = arith.constant 0 : i32
    %c0_i32_0 = arith.constant 0 : i32
    return %arg0, %c0_i32 : i32, i32
  }
  func.func @transform_1(%arg0: i32) -> (i32, i32) {
    %c0_i32 = arith.constant 0 : i32
    %c0_i32_0 = arith.constant 0 : i32
    %c0_i32_1 = arith.constant 0 : i32
    return %c0_i32, %c0_i32_0 : i32, i32
  }
  func.func @transform_2(%arg0: i32) -> (i32, i32) {
    %c0_i32 = arith.constant 0 : i32
    %c0_i32_0 = arith.constant 0 : i32
    %c0_i32_1 = arith.constant 0 : i32
    return %c0_i32, %c0_i32_0 : i32, i32
  }
  func.func @transform_3(%arg0: i32) -> (i32, i32) {
    %c0_i32 = arith.constant 0 : i32
    %c0_i32_0 = arith.constant 0 : i32
    %c0_i32_1 = arith.constant 0 : i32
    return %c0_i32, %c0_i32_0 : i32, i32
  }
  func.func @transform_4(%arg0: i32) -> (i32, i32) {
    %c0_i32 = arith.constant 0 : i32
    %c0_i32_0 = arith.constant 0 : i32
    %c0_i32_1 = arith.constant 0 : i32
    return %c0_i32, %c0_i32_0 : i32, i32
  }
  func.func @transform_5(%arg0: i32) -> (i32, i32) {
    %c0_i32 = arith.constant 0 : i32
    %c0_i32_0 = arith.constant 0 : i32
    %c0_i32_1 = arith.constant 0 : i32
    return %c0_i32, %c0_i32_0 : i32, i32
  }
  func.func @transform_6(%arg0: i32) -> (i32, i32) {
    %c0_i32 = arith.constant 0 : i32
    %c0_i32_0 = arith.constant 0 : i32
    %c0_i32_1 = arith.constant 0 : i32
    return %c0_i32, %c0_i32_0 : i32, i32
  }
  func.func @transform_7(%arg0: i32) -> (i32, i32) {
    %c0_i32 = arith.constant 0 : i32
    %c0_i32_0 = arith.constant 0 : i32
    %c0_i32_1 = arith.constant 0 : i32
    return %c0_i32, %c0_i32_0 : i32, i32
  }
  func.func @transform_8(%arg0: i32) -> (i32, i32) {
    %c0_i32 = arith.constant 0 : i32
    %c0_i32_0 = arith.constant 0 : i32
    %c0_i32_1 = arith.constant 0 : i32
    return %c0_i32, %c0_i32_0 : i32, i32
  }
  func.func @transform_9(%arg0: i32) -> (i32, i32) {
    %c0_i32 = arith.constant 0 : i32
    %c0_i32_0 = arith.constant 0 : i32
    %c0_i32_1 = arith.constant 0 : i32
    return %c0_i32, %c0_i32_0 : i32, i32
  }
  func.func @transform_10(%arg0: i32) -> (i32, i32) {
    %c0_i32 = arith.constant 0 : i32
    %c0_i32_0 = arith.constant 0 : i32
    %c0_i32_1 = arith.constant 0 : i32
    return %c0_i32, %c0_i32_0 : i32, i32
  }
  func.func @transform_11(%arg0: i32) -> (i32, i32) {
    %c0_i32 = arith.constant 0 : i32
    %c0_i32_0 = arith.constant 0 : i32
    %c0_i32_1 = arith.constant 0 : i32
    return %c0_i32, %c0_i32_0 : i32, i32
  }
  func.func @transform_12(%arg0: i32) -> (i32, i32) {
    %c0_i32 = arith.constant 0 : i32
    %c0_i32_0 = arith.constant 0 : i32
    return %arg0, %c0_i32 : i32, i32
  }
}

</mosaic_0001>

<bundles_post_ra>
// kernel: tpu_custom_call.1
= control target key start
LH: loop header
LB: loop body
LE: loop exit
PB: predicated region body
PF: predicated region fallthrough
CT: control target
= control target key end

     0   :  { %17 = vsyncpa [#allocation3], 0  ;;  %s2326_s0 = inlined_call_operand.hbm [shape: f32[8,32], index: 0, kind: input, shape index: {}]   ;;  %s2327_s1 = inlined_call_operand.hbm [shape: f32[32,128], index: 1, kind: input, shape index: {}]   ;;  %s2328_s2 = inlined_call_operand.vmem [shape: f32[1,128], index: 2, kind: input, shape index: {}]   ;;  %s2329_s3 = inlined_call_operand.hbm [shape: f32[128,128], index: 3, kind: input, shape index: {}]   ;;  %s2330_s4 = inlined_call_operand.vmem [shape: f32[1,128], index: 4, kind: input, shape index: {}]   ;;  %s2331_s5 = inlined_call_operand.vmem [shape: f32[1,32], index: 5, kind: input, shape index: {}]   ;;  %s2332_s6 = inlined_call_operand.hbm [shape: f32[32,96], index: 6, kind: input, shape index: {}]   ;;  %s2333_s7 = inlined_call_operand.vmem [shape: f32[1,96], index: 7, kind: input, shape index: {}]   ;;  %s2334_s8 = inlined_call_operand.hbm [shape: f32[32,32], index: 8, kind: input, shape index: {}]   ;;  %s2335_s9 = inlined_call_operand.vmem [shape: f32[1,32], index: 9, kind: input, shape index: {}]   ;;  %s2336_s10 = inlined_call_operand.hbm [shape: f32[32,128], index: 10, kind: input, shape index: {}]   ;;  %s2337_s11 = inlined_call_operand.vmem [shape: f32[1,128], index: 11, kind: input, shape index: {}]   ;;  %s2338_s12 = inlined_call_operand.hbm [shape: f32[8,128], index: 12, kind: output, shape index: {}]  }
   0x1   :  { %18 = vsyncpa [#allocation6], 0 }
   0x2   :  { %19 = vsyncpa [#allocation9], 0 }
   0x3   :  { %20 = vsyncpa [#allocation12], 0 }
   0x4   :  { %21 = vsyncpa [#allocation4], 0  ;;  %s1927_s21 = smov [#allocation5]  }
   0x5   :  { %s37_s22 = sshll.u32 %s1927_s21, 4  ;;  %s38_s22 = int_to_ptr.vmem [resolvable:$true] %s37_s22 }
   0x6   :  { %s1785_s23 = scalar_lea.vmem %s38_s22, 512  ;;  %p1790_p1 = scmp.lt.s32.totalorder %s38_s22, %s38_s22 }
   0x7   :  { %p1786_p0 = scmp.ne.s32.totalorder %s38_s22, %s1785_s23  ;;  %p1791_p2 = scmp.lt.s32.totalorder %s1785_s23, %s1785_s23 }
   0x9   :  { %p1792_p3 = por %p1791_p2, %p1790_p1 }
   0xb   :  { %p1793_p4 = pnand %p1792_p3, %p1786_p0 }
   0xd   :  { %1796 = shalt.err (!%p1793_p4)
}
   0xe   :  { %s1928_s24 = smov 128   ;;  %s1929_s25 = smov 8  }
   0xf   :  { %43 = dma.hbm_to_vmem [thread:$0]  %s2327_s1, 512, %s38_s22, [#allocation6], %s1928_s24, %s1928_s24, %s1929_s25  }
  0x10   :  { %s1930_s28 = smov [#allocation8]   ;;  %s1931_s30 = smov [#allocation2]  }
  0x11   :  { %s67_s29 = sshll.u32 %s1930_s28, 4  ;;  %s28_s13 = sshll.u32 %s1931_s30, 4  ;;  %s68_s29 = int_to_ptr.vmem [resolvable:$true] %s67_s29  ;;  %s29_s13 = int_to_ptr.vmem [resolvable:$true] %s28_s13 }
  0x12   :  { %s1805_s14 = scalar_lea.vmem %s68_s29, 512  ;;  %p1810_p6 = scmp.lt.s32.totalorder %s68_s29, %s68_s29 }
  0x13   :  { %p1806_p5 = scmp.ne.s32.totalorder %s68_s29, %s1805_s14  ;;  %p1811_p7 = scmp.lt.s32.totalorder %s1805_s14, %s1805_s14 }
  0x15   :  { %p1812_p8 = por %p1811_p7, %p1810_p6 }
  0x17   :  { %p1813_p9 = pnand %p1812_p8, %p1806_p5 }
  0x19   :  { %1816 = shalt.err (!%p1813_p9)
}
  0x1a   :  { %73 = dma.hbm_to_vmem [thread:$0]  %s2332_s6, 512, %s68_s29, [#allocation9], %s1928_s24, %s1928_s24, %s1929_s25  }
  0x1b   :  { %s1825_s1 = scalar_lea.vmem %s29_s13, 128  ;;  %p1830_p11 = scmp.lt.s32.totalorder %s29_s13, %s29_s13 }
  0x1c   :  { %p1826_p10 = scmp.ne.s32.totalorder %s29_s13, %s1825_s1  ;;  %p1831_p12 = scmp.lt.s32.totalorder %s1825_s1, %s1825_s1 }
  0x1e   :  { %p1832_p13 = por %p1831_p12, %p1830_p11 }
  0x20   :  { %p1833_p0 = pnand %p1832_p13, %p1826_p10 }
  0x22   :  { %1836 = shalt.err (!%p1833_p0)
}
  0x23   :  { %31 = dma.hbm_to_vmem [thread:$0]  %s2326_s0, 128, %s29_s13, [#allocation3]  }
  0x24   :  { %s1932_s19 = smov [#allocation7]   ;;  %s1933_s21 = smov [#allocation10]  }
  0x25   :  { %s51_s20 = sshll.u32 %s1932_s19, 4  ;;  %s81_s22 = sshll.u32 %s1933_s21, 4  ;;  %s52_s20 = int_to_ptr.vmem [resolvable:$true] %s51_s20  ;;  %s82_s22 = int_to_ptr.vmem [resolvable:$true] %s81_s22 }
  0x26   :  { %s1845_s23 = scalar_lea.vmem %s52_s20, 2048  ;;  %p1850_p2 = scmp.lt.s32.totalorder %s52_s20, %s52_s20 }
  0x27   :  { %p1846_p1 = scmp.ne.s32.totalorder %s52_s20, %s1845_s23  ;;  %p1851_p3 = scmp.lt.s32.totalorder %s1845_s23, %s1845_s23 }
  0x29   :  { %p1852_p4 = por %p1851_p3, %p1850_p2 }
  0x2b   :  { %p1853_p5 = pnand %p1852_p4, %p1846_p1 }
  0x2d   :  { %1856 = shalt.err (!%p1853_p5)
}
  0x2e   :  { %57 = dma.hbm_to_vmem [thread:$0]  %s2329_s3, 2048, %s52_s20, [#allocation6], %s1928_s24, %s1928_s24, %s1929_s25  }
  0x2f   :  { %s1865_s0 = scalar_lea.vmem %s82_s22, 512  ;;  %p1870_p7 = scmp.lt.s32.totalorder %s82_s22, %s82_s22 }
  0x30   :  { %p1866_p6 = scmp.ne.s32.totalorder %s82_s22, %s1865_s0  ;;  %p1871_p8 = scmp.lt.s32.totalorder %s1865_s0, %s1865_s0 }
  0x32   :  { %p1872_p9 = por %p1871_p8, %p1870_p7 }
  0x34   :  { %p1873_p10 = pnand %p1872_p9, %p1866_p6 }
  0x36   :  { %1876 = shalt.err (!%p1873_p10)
}
  0x37   :  { %87 = dma.hbm_to_vmem [thread:$0]  %s2334_s8, 512, %s82_s22, [#allocation9], %s1928_s24, %s1928_s24, %s1929_s25  }
  0x38   :  { %s1934_s29 = smov [#allocation11]  }
  0x39   :  { %s95_s30 = sshll.u32 %s1934_s29, 4  ;;  %s96_s30 = int_to_ptr.vmem [resolvable:$true] %s95_s30 }
  0x3a   :  { %s1885_s13 = scalar_lea.vmem %s96_s30, 512  ;;  %p1890_p12 = scmp.lt.s32.totalorder %s96_s30, %s96_s30 }
  0x3b   :  { %p1886_p11 = scmp.ne.s32.totalorder %s96_s30, %s1885_s13  ;;  %p1891_p13 = scmp.lt.s32.totalorder %s1885_s13, %s1885_s13 }
  0x3d   :  { %p1892_p0 = por %p1891_p13, %p1890_p12 }
  0x3f   :  { %p1893_p1 = pnand %p1892_p0, %p1886_p11 }
  0x41   :  { %1896 = shalt.err (!%p1893_p1)
}
  0x42   :  { %101 = dma.hbm_to_vmem [thread:$0]  %s2336_s10, 512, %s96_s30, [#allocation12], %s1928_s24, %s1928_s24, %s1929_s25  }
  0x43   :  { %1917 = dma.done.wait [#allocation3], 128  }
  0x44   :  { %1918 = vsyncadd [#allocation3], 4294967168 }
  0x45   :  { %1919 = dma.done.wait [#allocation6], 2560  }
  0x46   :  { %1920 = vsyncadd [#allocation6], 4294964736 }
  0x47   :  { %1921 = dma.done.wait [#allocation9], 1024  }
  0x48   :  { %1922 = vsyncadd [#allocation9], 4294966272 }
  0x49   :  { %1923 = dma.done.wait [#allocation12], 512  }
  0x4a   :  { %1924 = vsyncadd [#allocation12], 4294966784  ;;  %v1935_v0 = vmov 0.0   ;;  %vm1936_vm0 = vmmov 0   ;;  %v126_v1 = vld [vmem:[#allocation5 + $0x18] sm:$0xff]  ;;  %v125_v2 = vld [vmem:[#allocation5 + $0x10] sm:$0xff] }
  0x4b   :  { %1545 = vmatprep.subr.mxu0 %v1935_v0  ;;  %1553 = vmatprep.mubr.msk.f32.mxu0 %vm1936_vm0, %v1935_v0  ;;  %v226_v3 = vld [vmem:[#allocation7 + $0x78] sm:$0xff]  ;;  %v124_v4 = vld [vmem:[#allocation5 + $0x8] sm:$0xff]  ;;  %v225_v5 = vld [vmem:[#allocation7 + $0x70] sm:$0xff]  ;;  %vm134_vm1 = vcmask 261120   ;;  %s1938_s16 = smov 96   ;;  %s1939_s1 = smov 64  }
  0x4c   :  { %1556 = vmatprep.subr.mxu1 %v1935_v0  ;;  %1588 = vmatprep.mubr.msk.f32.mxu1 %vm1936_vm0, %v1935_v0  ;;  %v224_v6 = vld [vmem:[#allocation7 + $0x68] sm:$0xff]  ;;  %v123_v7 = vld [vmem:[#allocation5] sm:$0xff]  ;;  %v122_v8 = vld [vmem:[#allocation2] sm:$0xff]  ;;  %s1940_s18 = smov 88   ;;  %s1942_s19 = smov 120   ;;  %vm455_vm3 = vcmask 64512  }
  0x4d   :  { %1546 = vmatpush3.msra.mxu0 %v126_v1  ;;  %1557 = vmatpush3.msra.mxu1 %v226_v3  ;;  %v223_v9 = vld [vmem:[#allocation7 + $0x60] sm:$0xff]  ;;  %v222_v10 = vld [vmem:[#allocation7 + $0x58] sm:$0xff]  ;;  %v221_v11 = vld [vmem:[#allocation7 + $0x50] sm:$0xff]  ;;  %s1943_s20 = smov 112   ;;  %vm542_vm5 = vcmask 326656   ;;  %s1945_s21 = smov 72  }
  0x4e   :  { %1547 = vmatprep.subr.mxu0 %v1935_v0  ;;  %1558 = vmatprep.subr.mxu1 %v1935_v0  ;;  %v220_v12 = vld [vmem:[#allocation7 + $0x48] sm:$0xff]  ;;  %v219_v13 = vld [vmem:[#allocation7 + $0x40] sm:$0xff]  ;;  %v218_v14 = vld [vmem:[#allocation7 + $0x38] sm:$0xff]  ;;  %s1946_s22 = smov 104   ;;  %s1947_s27 = smov [#allocation13]  }
  0x4f   :  { %1548 = vmatpush3.msra.mxu0 %v125_v2  ;;  %1559 = vmatpush3.msra.mxu1 %v225_v5  ;;  %v217_v15 = vld [vmem:[#allocation7 + $0x30] sm:$0xff]  ;;  %v216_v16 = vld [vmem:[#allocation7 + $0x28] sm:$0xff]  ;;  %v215_v17 = vld [vmem:[#allocation7 + $0x20] sm:$0xff]  ;;  %s1382_s28 = sshll.u32 %s1947_s27, 4  ;;  %s1383_s28 = int_to_ptr.vmem [resolvable:$true] %s1382_s28 }
  0x50   :  { %1549 = vmatprep.subr.mxu0 %v1935_v0  ;;  %1560 = vmatprep.subr.mxu1 %v1935_v0  ;;  %v214_v18 = vld [vmem:[#allocation7 + $0x18] sm:$0xff]  ;;  %v213_v19 = vld [vmem:[#allocation7 + $0x10] sm:$0xff]  ;;  %v212_v20 = vld [vmem:[#allocation7 + $0x8] sm:$0xff]  ;;  %s1897_s29 = scalar_lea.vmem %s1383_s28, 128  ;;  %p1902_p3 = scmp.lt.s32.totalorder %s1383_s28, %s1383_s28 }
  0x51   :  { %1550 = vmatpush3.msra.mxu0 %v124_v4  ;;  %1561 = vmatpush3.msra.mxu1 %v224_v6  ;;  %v211_v21 = vld [vmem:[#allocation7] sm:$0xff]  ;;  %v320_v22 = vld [vmem:[#allocation8 + $0x18] sm:$0xff]  ;;  %v319_v23 = vld [vmem:[#allocation8 + $0x10] sm:$0xff]  ;;  %p1898_p2 = scmp.ne.s32.totalorder %s1383_s28, %s1897_s29  ;;  %p1903_p4 = scmp.lt.s32.totalorder %s1897_s29, %s1897_s29 }
  0x52   :  { %1551 = vmatprep.subr.mxu0 %v1935_v0  ;;  %1562 = vmatprep.subr.mxu1 %v1935_v0  ;;  %v318_v24 = vld [vmem:[#allocation8 + $0x8] sm:$0xff]  ;;  %v317_v25 = vld [vmem:[#allocation8] sm:$0xff]  ;;  %v1397_v26 = vld [vmem:[%s2331_s5] ss:$0 sm:$0xff] }
  0x53   :  { %1552 = vmatpush3.msra.mxu0 %v123_v7  ;;  %1563 = vmatpush3.msra.mxu1 %v223_v9  ;;  %v1394_v27 = vld [vmem:[%s2328_s2] ss:$0 sm:$0xff]  ;;  %s1937_s2 = smov 32   ;;  %p1904_p5 = por %p1903_p4, %p1902_p3 }
  0x54   :  { %1554 = vmatmul.mubr.msk.f32.vlgmr.msra.gmra.mxu0 %vm134_vm1, %v122_v8  ;;  %1564 = vmatprep.subr.mxu1 %v1935_v0  ;;  %v1396_v33 = vld [vmem:[%s2330_s4] ss:$0 sm:$0xff] }
  0x55   :  { %1591 = vmatprep.subr.mxu0 %v1935_v0  ;;  %1565 = vmatpush3.msra.mxu1 %v222_v10  ;;  %v1398_v46 = vld [vmem:[%s2333_s7] ss:$0 sm:$0xff]  ;;  %s1941_s7 = smov 80   ;;  %p1905_p6 = pnand %p1904_p5, %p1898_p2 }
  0x56   :  { %1599 = vmatprep.mubr.msk.f32.mxu0 %vm1936_vm0, %v1935_v0  ;;  %1566 = vmatprep.subr.mxu1 %v1935_v0 }
  0x57   :  { %1567 = vmatpush3.msra.mxu1 %v221_v11  ;;  %1592 = vmatpush3.msra.mxu0 %v320_v22 }
  0x58   :  { %1568 = vmatprep.subr.mxu1 %v1935_v0  ;;  %1593 = vmatprep.subr.mxu0 %v1935_v0 }
  0x59   :  { %1569 = vmatpush3.msra.mxu1 %v220_v12  ;;  %1594 = vmatpush3.msra.mxu0 %v319_v23 }
  0x5a   :  { %1570 = vmatprep.subr.mxu1 %v1935_v0  ;;  %1595 = vmatprep.subr.mxu0 %v1935_v0 }
  0x5b   :  { %1571 = vmatpush3.msra.mxu1 %v219_v13  ;;  %1596 = vmatpush3.msra.mxu0 %v318_v24 }
  0x5c   :  { %1572 = vmatprep.subr.mxu1 %v1935_v0  ;;  %1597 = vmatprep.subr.mxu0 %v1935_v0 }
  0x5d   :  { %1573 = vmatpush3.msra.mxu1 %v218_v14  ;;  %1598 = vmatpush3.msra.mxu0 %v317_v25 }
  0x5e   :  { %1574 = vmatprep.subr.mxu1 %v1935_v0  ;;  %1600 = vmatmul.mubr.msk.f32.vlgmr.msra.gmra.mxu0 %vm134_vm1, %v1397_v26 }
  0x5f   :  { %1575 = vmatpush3.msra.mxu1 %v217_v15  ;;  %1614 = vmatprep.subr.mxu0 %v1935_v0  ;;  %v433_v15 = vlaneseq }
  0x60   :  { %1576 = vmatprep.subr.mxu1 %v1935_v0  ;;  %1602 = vmatprep.mubr.msk.f32.mxu0 %vm1936_vm0, %v1935_v0 }
  0x61   :  { %1577 = vmatpush3.msra.mxu1 %v216_v16  ;;  %v2184_v16 = vand.u32 127, %v433_v15 }
  0x62   :  { %1578 = vmatprep.subr.mxu1 %v1935_v0 }
  0x63   :  { %1579 = vmatpush3.msra.mxu1 %v215_v17  ;;  %v434_v17 = vshrl.u32 %v433_v15, 7  ;;  %vm676_vm6 = vcmp.ge.s32.totalorder %v2184_v16, 8  ;;  %vm677_vm7 = vcmp.lt.s32.totalorder %v2184_v16, 16  ;;  %vm1122_vm8 = vcmp.ge.s32.totalorder %v2184_v16, 24 }
  0x64   :  { %1580 = vmatprep.subr.mxu1 %v1935_v0  ;;  %vm1123_vm9 = vcmp.lt.s32.totalorder %v2184_v16, 32  ;;  %vm2219_vm10 = vmand %vm676_vm6, %vm677_vm7  ;;  %vm549_vm12 = vcmp.lt.s32.totalorder %v2184_v16, 8  ;;  %vm935_vm13 = vcmp.ge.s32.totalorder %v2184_v16, 16  ;;  %vm936_vm14 = vcmp.lt.s32.totalorder %v2184_v16, 24 }
  0x65   :  { %1581 = vmatpush3.msra.mxu1 %v214_v18  ;;  %v437_v18 = vand.u32 7, %v2184_v16  ;;  %vm2223_vm11 = vmand %vm1122_vm8, %vm1123_vm9 }
  0x66   :  { %1582 = vmatprep.subr.mxu1 %v1935_v0  ;;  %vm937_vm15 = vmand %vm935_vm13, %vm936_vm14 }
  0x67   :  { %1583 = vmatpush3.msra.mxu1 %v213_v19  ;;  %vm438_vm4 = vcmp.eq.s32.totalorder %v437_v18, %v434_v17  ;;  %v1944_v19 = vmov -1e+09  }
  0x68   :  { %1584 = vmatprep.subr.mxu1 %v1935_v0 }
  0x69   :  { %1585 = vmatpush3.msra.mxu1 %v212_v20  ;;  %v2187_v20 = vsel %vm438_vm4, 0.0, %v1944_v19  ;;  %v1209_v19 = vld [vmem:[#allocation10 + $0x18] sm:$0xff] }
  0x6a   :  { %1586 = vmatprep.subr.mxu1 %v1935_v0 }
  0x6b   :  { %1587 = vmatpush3.msra.mxu1 %v211_v21 }
  0x6c   :  { %1627 = vmatprep.subr.mxu1 %v1935_v0 }
 0x114   :  { %v204_v28 = vpop.f32.mrf.mxu0 }
 0x115   :  { %v205_v29 = vadd.f32 %v1394_v27, %v204_v28 }
 0x116   :  { %v1555_v30 = vpop.f32.mrf.mxu0 }
 0x117   :  { %v209_v31 = vmul.f32 0.01, %v205_v29  ;;  %vm208_vm2 = vcmp.ge.f32.partialorder %v205_v29, 0.0 }
 0x119   :  { %v210_v32 = vsel %vm208_vm2, %v205_v29, %v209_v31 }
 0x11a   :  { %1589 = vmatmul.mubr.f32.vlgmr.msra.gmra.mxu1 %v210_v32 }
 0x11b   :  { %1637 = vmatprep.mubr.msk.f32.mxu1 %vm1936_vm0, %v1935_v0 }
 0x11e   :  { %v404_v34 = vpop.f32.mrf.mxu0 }
 0x11f   :  { %v405_v58 = vadd.f32 %v1398_v46, %v404_v34 }
 0x120   :  { %v1601_v36 = vpop.f32.mrf.mxu0 }
 0x121   :  { %v2128_v60 = vmax.f32 %v405_v58, 0.0 }
 0x1da   :  { %v300_v35 = vpop.f32.mrf.mxu1 }
 0x1db   :  { %v301_v37 = vadd.f32 %v1396_v33, %v300_v35 }
 0x1dc   :  { %v1590_v38 = vpop.f32.mrf.mxu1 }
 0x1dd   :  { %315 = vrot.lane.b32.xlu1 %v301_v37, %s1937_s2  ;;  %311 = vrot.lane.b32.xlu0 %v301_v37, %s1938_s16 }
 0x1de   :  { %1603 = vmatmul.mubr.msk.f32.gmra.mxu0 %vm134_vm1, %v301_v37 }
 0x1df   :  { %1605 = vmatprep.mubr.msk.f32.mxu0 %vm1936_vm0, %v1935_v0 }
 0x1e1   :  { %313 = vrot.lane.b32.xlu0 %v301_v37, %s1939_s1 }
 0x24f   :  { %v312_v39 = vpop.permute.xlu0 %311  ;;  %v316_v41 = vpop.permute.xlu1 %315 }
 0x250   :  { %1606 = vmatmul.mubr.msk.f32.gmra.mxu0 %vm134_vm1, %v312_v39 }
 0x251   :  { %1608 = vmatprep.mubr.msk.f32.mxu0 %vm1936_vm0, %v1935_v0 }
 0x253   :  { %v314_v40 = vpop.permute.xlu0 %313 }
 0x254   :  { %1609 = vmatmul.mubr.msk.f32.gmra.mxu0 %vm134_vm1, %v314_v40 }
 0x255   :  { %1611 = vmatprep.mubr.msk.f32.mxu0 %vm1936_vm0, %v1935_v0 }
 0x258   :  { %1612 = vmatmul.mubr.msk.f32.gmra.mxu0 %vm134_vm1, %v316_v41 }
 0x259   :  { %1624 = vmatprep.mubr.msk.f32.mxu0 %vm1936_vm0, %v1935_v0 }
 0x29e   :  { %v409_v42 = vpop.f32.mrf.mxu0 }
 0x29f   :  { %v410_v56 = vadd.f32 %v1398_v46, %v409_v42 }
 0x2a0   :  { %v1604_v43 = vpop.f32.mrf.mxu0 }
 0x2a1   :  { %v2123_v59 = vmax.f32 %v410_v56, 0.0 }
 0x310   :  { %v414_v44 = vpop.f32.mrf.mxu0 }
 0x311   :  { %v415_v54 = vadd.f32 %v1398_v46, %v414_v44 }
 0x312   :  { %v1607_v45 = vpop.f32.mrf.mxu0 }
 0x313   :  { %v2118_v57 = vmax.f32 %v415_v54, 0.0 }
 0x314   :  { %v419_v47 = vpop.f32.mrf.mxu0 }
 0x315   :  { %v420_v48 = vadd.f32 %v1398_v46, %v419_v47 }
 0x316   :  { %v1610_v49 = vpop.f32.mrf.mxu0 }
 0x317   :  { %v2110_v50 = vmax.f32 %v420_v48, 0.0 }
 0x318   :  { %v424_v51 = vpop.f32.mrf.mxu0 }
 0x319   :  { %v425_v52 = vadd.f32 %v1398_v46, %v424_v51  ;;  %581 = vrot.lane.b32.xlu0 %v2110_v50, %s1940_s18 }
 0x31a   :  { %v1613_v53 = vpop.f32.mrf.mxu0 }
 0x31b   :  { %v2113_v55 = vmax.f32 %v425_v52, 0.0 }
 0x31d   :  { %453 = vrot.lane.b32.xlu0 %v2113_v55, %s1938_s16  ;;  %583 = vrot.lane.b32.xlu1 %v2113_v55, %s1940_s18 }
 0x321   :  { %451 = vrot.lane.b32.xlu0 %v2110_v50, %s1938_s16  ;;  %579 = vrot.lane.b32.xlu1 %v2118_v57, %s1940_s18 }
 0x325   :  { %449 = vrot.lane.b32.xlu0 %v2118_v57, %s1938_s16  ;;  %577 = vrot.lane.b32.xlu1 %v2123_v59, %s1940_s18 }
 0x329   :  { %842 = vrot.lane.b32.xlu0 %v2113_v55, %s1941_s7  ;;  %575 = vrot.lane.b32.xlu1 %v2128_v60, %s1940_s18 }
 0x32d   :  { %840 = vrot.lane.b32.xlu0 %v2110_v50, %s1941_s7  ;;  %573 = vrot.lane.b32.xlu1 %v2128_v60, %s1942_s19 }
 0x331   :  { %838 = vrot.lane.b32.xlu0 %v2118_v57, %s1941_s7  ;;  %447 = vrot.lane.b32.xlu1 %v2123_v59, %s1938_s16 }
 0x335   :  { %834 = vrot.lane.b32.xlu0 %v2128_v60, %s1941_s7  ;;  %445 = vrot.lane.b32.xlu1 %v2128_v60, %s1938_s16 }
 0x339   :  { %836 = vrot.lane.b32.xlu1 %v2123_v59, %s1941_s7 }
 0x33d   :  { %832 = vrot.lane.b32.xlu1 %v2128_v60, %s1943_s20 }
 0x341   :  { %559 = vrot.lane.b32.xlu1 %v2110_v50, %s1939_s1 }
 0x38b   :  { %v582_v61 = vpop.permute.xlu0 %581 }
 0x38f   :  { %v454_v62 = vpop.permute.xlu0 %453  ;;  %v584_v63 = vpop.permute.xlu1 %583 }
 0x390   :  { %1615 = vmatpush3.xpose.msk.msra.mxu0 %vm455_vm3, %v454_v62  ;;  %1628 = vmatpush3.xpose.msk.msra.mxu1 %vm455_vm3, %v584_v63 }
 0x391   :  { %1616 = vmatprep.subr.mxu0 %v1935_v0  ;;  %1629 = vmatprep.subr.mxu1 %v1935_v0 }
 0x393   :  { %v452_v1 = vpop.permute.xlu0 %451  ;;  %v580_v2 = vpop.permute.xlu1 %579 }
 0x394   :  { %1617 = vmatpush3.xpose.msk.msra.mxu0 %vm455_vm3, %v452_v1  ;;  %1630 = vmatpush3.xpose.msk.msra.mxu1 %vm455_vm3, %v582_v61 }
 0x395   :  { %1618 = vmatprep.subr.mxu0 %v1935_v0  ;;  %1631 = vmatprep.subr.mxu1 %v1935_v0 }
 0x397   :  { %v450_v3 = vpop.permute.xlu0 %449  ;;  %v578_v4 = vpop.permute.xlu1 %577 }
 0x398   :  { %1619 = vmatpush3.xpose.msk.msra.mxu0 %vm455_vm3, %v450_v3  ;;  %1632 = vmatpush3.xpose.msk.msra.mxu1 %vm455_vm3, %v580_v2 }
 0x399   :  { %1633 = vmatprep.subr.mxu1 %v1935_v0  ;;  %1620 = vmatprep.subr.mxu0 %v1935_v0 }
 0x39b   :  { %v576_v5 = vpop.permute.xlu1 %575  ;;  %v843_v6 = vpop.permute.xlu0 %842 }
 0x39c   :  { %1634 = vmatpush3.xpose.msk.msra.mxu1 %vm455_vm3, %v578_v4 }
 0x39d   :  { %1635 = vmatprep.subr.mxu1 %v1935_v0 }
 0x39f   :  { %v574_v7 = vpop.permute.xlu1 %573  ;;  %v841_v9 = vpop.permute.xlu0 %840 }
 0x3a0   :  { %1636 = vmatpush3.xpose.msk.msra.mxu1 %vm455_vm3, %v576_v5 }
 0x3a1   :  { %1666 = vmatprep.subr.mxu1 %v1935_v0 }
 0x3a3   :  { %1638 = vmatmul.mubr.msk.f32.vlgmr.msra.gmra.mxu1 %vm455_vm3, %v574_v7  ;;  %v448_v8 = vpop.permute.xlu1 %447  ;;  %v839_v11 = vpop.permute.xlu0 %838 }
 0x3a4   :  { %1621 = vmatpush3.xpose.msk.msra.mxu0 %vm455_vm3, %v448_v8  ;;  %1667 = vmatpush3.xpose.msk.msra.mxu1 %vm455_vm3, %v843_v6 }
 0x3a5   :  { %1622 = vmatprep.subr.mxu0 %v1935_v0  ;;  %1668 = vmatprep.subr.mxu1 %v1935_v0 }
 0x3a6   :  { %1676 = vmatprep.mubr.msk.f32.mxu1 %vm1936_vm0, %v1935_v0 }
 0x3a7   :  { %v446_v10 = vpop.permute.xlu1 %445  ;;  %v835_v13 = vpop.permute.xlu0 %834 }
 0x3a8   :  { %1623 = vmatpush3.xpose.msk.msra.mxu0 %vm455_vm3, %v446_v10  ;;  %1669 = vmatpush3.xpose.msk.msra.mxu1 %vm455_vm3, %v841_v9 }
 0x3a9   :  { %1670 = vmatprep.subr.mxu1 %v1935_v0  ;;  %1640 = vmatprep.subr.mxu0 %v1935_v0 }
 0x3ab   :  { %1625 = vmatmul.mubr.msk.f32.vlgmr.msra.gmra.mxu0 %vm455_vm3, %v2128_v60  ;;  %v837_v12 = vpop.permute.xlu1 %836 }
 0x3ac   :  { %1671 = vmatpush3.xpose.msk.msra.mxu1 %vm455_vm3, %v839_v11  ;;  %1650 = vmatprep.mubr.msk.f32.mxu0 %vm1936_vm0, %v1935_v0 }
 0x3ad   :  { %1672 = vmatprep.subr.mxu1 %v1935_v0 }
 0x3af   :  { %v833_v14 = vpop.permute.xlu1 %832 }
 0x3b0   :  { %1673 = vmatpush3.xpose.msk.msra.mxu1 %vm455_vm3, %v837_v12 }
 0x3b1   :  { %1674 = vmatprep.subr.mxu1 %v1935_v0 }
 0x3b3   :  { %v560_v45 = vpop.permute.xlu1 %559 }
 0x3b4   :  { %1675 = vmatpush3.xpose.msk.msra.mxu1 %vm455_vm3, %v835_v13 }
 0x3b5   :  { %1705 = vmatprep.subr.mxu1 %v1935_v0 }
 0x3b7   :  { %1677 = vmatmul.mubr.msk.f32.vlgmr.msra.gmra.mxu1 %vm455_vm3, %v833_v14 }
 0x3b8   :  { %1715 = vmatprep.mubr.msk.f32.mxu1 %vm1936_vm0, %v1935_v0 }
 0x463   :  { %v663_v21 = vpop.f32.mrf.mxu1 }
 0x464   :  { %v667_v22 = vmul.f32 0.35355338, %v663_v21  ;;  %v1208_v21 = vld [vmem:[#allocation10 + $0x10] sm:$0xff] }
 0x465   :  { %v1639_v23 = vpop.f32.mrf.mxu1 }
 0x466   :  { %v668_v24 = vadd.f32 %v667_v22, %v2187_v20  ;;  %v1206_v22 = vld [vmem:[#allocation10] sm:$0xff]  ;;  %v1294_v23 = vld [vmem:[#allocation11 + $0x18] sm:$0xff] }
 0x468   :  { %v669_v25 = vmul.f32 1.442695, %v668_v24 }
 0x46a   :  { %1761 = vpow2.f32 %v669_v25 }
 0x46b   :  { %v534_v26 = vpop.f32.mrf.mxu0 }
 0x46c   :  { %v538_v27 = vmul.f32 0.35355338, %v534_v26 }
 0x46d   :  { %v1626_v28 = vpop.f32.mrf.mxu0 }
 0x46e   :  { %v539_v29 = vadd.f32 %v538_v27, %v2187_v20  ;;  %v1293_v27 = vld [vmem:[#allocation11 + $0x10] sm:$0xff]  ;;  %v1292_v28 = vld [vmem:[#allocation11 + $0x8] sm:$0xff] }
 0x470   :  { %v540_v30 = vmul.f32 1.442695, %v539_v29  ;;  %v1291_v29 = vld [vmem:[#allocation11] sm:$0xff] }
 0x472   :  { %1763 = vpow2.f32 %v540_v30  ;;  %v1452_v30 = vld [vmem:[%s2335_s9] ss:$0 sm:$0xff] }
 0x477   :  { %v1762_v31 = vpop.eup %1761  ;;  %v922_v32 = vpop.f32.mrf.mxu1 }
 0x478   :  { %v671_v33 = vsel %vm542_vm5, %v1762_v31, 0.0  ;;  %v926_v37 = vmul.f32 0.35355338, %v922_v32 }
 0x479   :  { %672 = vadd.xlane.f32.xlu0 %v671_v33  ;;  %v1678_v34 = vpop.f32.mrf.mxu1 }
 0x47a   :  { %v927_v38 = vadd.f32 %v926_v37, %v2187_v20 }
 0x47c   :  { %v928_v39 = vmul.f32 1.442695, %v927_v38 }
 0x47e   :  { %1765 = vpow2.f32 %v928_v39 }
 0x47f   :  { %v2192_v35 = vpop.eup %1763 }
 0x480   :  { %v543_v36 = vsel %vm542_vm5, %v2192_v35, 0.0 }
 0x481   :  { %544 = vadd.xlane.f32.xlu1 %v543_v36 }
 0x48b   :  { %v2208_v40 = vpop.eup %1765 }
 0x48c   :  { %v930_v41 = vsel %vm542_vm5, %v2208_v40, 0.0 }
 0x48f   :  { %561 = vrot.lane.b32.xlu0 %v2113_v55, %s1939_s1 }
 0x492   :  { %557 = vrot.lane.b32.xlu1 %v2118_v57, %s1939_s1 }
 0x496   :  { %555 = vrot.lane.b32.xlu1 %v2123_v59, %s1939_s1 }
 0x49a   :  { %553 = vrot.lane.b32.xlu1 %v2128_v60, %s1939_s1 }
 0x49e   :  { %1029 = vrot.lane.b32.xlu1 %v2113_v55, %s1945_s21 }
 0x4a2   :  { %1027 = vrot.lane.b32.xlu1 %v2110_v50, %s1945_s21 }
 0x4a6   :  { %1025 = vrot.lane.b32.xlu1 %v2118_v57, %s1945_s21 }
 0x4aa   :  { %1023 = vrot.lane.b32.xlu1 %v2123_v59, %s1945_s21 }
 0x4ae   :  { %931 = vadd.xlane.f32.xlu0 %v930_v41  ;;  %1021 = vrot.lane.b32.xlu1 %v2128_v60, %s1945_s21 }
 0x4c4   :  { %1019 = vrot.lane.b32.xlu0 %v2128_v60, %s1946_s22 }
 0x502   :  { %v673_v42 = vpop.xlane.xlu0 %672 }
 0x503   :  { %1767 = vrcp.f32 %v673_v42 }
 0x506   :  { %v562_v46 = vpop.permute.xlu0 %561 }
 0x507   :  { %1641 = vmatpush3.msk.msra.mxu0 %vm2219_vm10, %v562_v46  ;;  %1706 = vmatpush3.msk.msra.mxu1 %vm2223_vm11, %v562_v46 }
 0x508   :  { %1642 = vmatprep.subr.mxu0 %v1935_v0  ;;  %1707 = vmatprep.subr.mxu1 %v1935_v0 }
 0x509   :  { %1643 = vmatpush3.msk.msra.mxu0 %vm2219_vm10, %v560_v45  ;;  %1708 = vmatpush3.msk.msra.mxu1 %vm2223_vm11, %v560_v45 }
 0x50a   :  { %v545_v47 = vpop.xlane.xlu1 %544  ;;  %1644 = vmatprep.subr.mxu0 %v1935_v0  ;;  %1709 = vmatprep.subr.mxu1 %v1935_v0 }
 0x50b   :  { %1769 = vrcp.f32 %v545_v47 }
 0x50e   :  { %v558_v48 = vpop.permute.xlu1 %557 }
 0x50f   :  { %1645 = vmatpush3.msk.msra.mxu0 %vm2219_vm10, %v558_v48  ;;  %1710 = vmatpush3.msk.msra.mxu1 %vm2223_vm11, %v558_v48 }
 0x510   :  { %1646 = vmatprep.subr.mxu0 %v1935_v0  ;;  %1711 = vmatprep.subr.mxu1 %v1935_v0  ;;  %v1768_v50 = vpop.eup %1767 }
 0x511   :  { %v675_v52 = vmul.f32 %v1768_v50, %v1762_v31 }
 0x512   :  { %v556_v49 = vpop.permute.xlu1 %555 }
 0x513   :  { %1647 = vmatpush3.msk.msra.mxu0 %vm2219_vm10, %v556_v49  ;;  %1712 = vmatpush3.msk.msra.mxu1 %vm2223_vm11, %v556_v49 }
 0x514   :  { %1648 = vmatprep.subr.mxu0 %v1935_v0  ;;  %1713 = vmatprep.subr.mxu1 %v1935_v0 }
 0x516   :  { %v554_v51 = vpop.permute.xlu1 %553 }
 0x517   :  { %1649 = vmatpush3.msk.msra.mxu0 %vm2219_vm10, %v554_v51  ;;  %1714 = vmatpush3.msk.msra.mxu1 %vm2223_vm11, %v554_v51 }
 0x518   :  { %1651 = vmatmul.mubr.msk.f32.vlgmr.msra.gmra.mxu0 %vm542_vm5, %v675_v52  ;;  %1653 = vmatprep.subr.mxu0 %v1935_v0  ;;  %v1770_v53 = vpop.eup %1769 }
 0x519   :  { %1654 = vmatpush3.msk.msra.mxu0 %vm549_vm12, %v562_v46  ;;  %1663 = vmatprep.mubr.msk.f32.mxu0 %vm1936_vm0, %v1935_v0  ;;  %v547_v54 = vmul.f32 %v1770_v53, %v2192_v35  ;;  %v1454_v35 = vld [vmem:[%s2337_s11] ss:$0 sm:$0xff] }
 0x51a   :  { %1655 = vmatprep.subr.mxu0 %v1935_v0  ;;  %1718 = vmatprep.subr.mxu1 %v1935_v0  ;;  %v1030_v56 = vpop.permute.xlu1 %1029 }
 0x51b   :  { %1656 = vmatpush3.msk.msra.mxu0 %vm549_vm12, %v560_v45 }
 0x51c   :  { %1657 = vmatprep.subr.mxu0 %v1935_v0 }
 0x51d   :  { %1658 = vmatpush3.msk.msra.mxu0 %vm549_vm12, %v558_v48 }
 0x51e   :  { %1659 = vmatprep.subr.mxu0 %v1935_v0  ;;  %v1028_v58 = vpop.permute.xlu1 %1027 }
 0x51f   :  { %1660 = vmatpush3.msk.msra.mxu0 %vm549_vm12, %v556_v49 }
 0x520   :  { %1661 = vmatprep.subr.mxu0 %v1935_v0 }
 0x521   :  { %1662 = vmatpush3.msk.msra.mxu0 %vm549_vm12, %v554_v51 }
 0x522   :  { %1664 = vmatmul.mubr.msk.f32.vlgmr.msra.gmra.mxu0 %vm542_vm5, %v547_v54  ;;  %1679 = vmatprep.subr.mxu0 %v1935_v0  ;;  %v1026_v60 = vpop.permute.xlu1 %1025 }
 0x523   :  { %1680 = vmatpush3.msk.msra.mxu0 %vm937_vm15, %v562_v46  ;;  %1689 = vmatprep.mubr.msk.f32.mxu0 %vm1936_vm0, %v1935_v0 }
 0x524   :  { %1681 = vmatprep.subr.mxu0 %v1935_v0 }
 0x525   :  { %1682 = vmatpush3.msk.msra.mxu0 %vm937_vm15, %v560_v45 }
 0x526   :  { %1683 = vmatprep.subr.mxu0 %v1935_v0  ;;  %v1024_v61 = vpop.permute.xlu1 %1023 }
 0x527   :  { %1684 = vmatpush3.msk.msra.mxu0 %vm937_vm15, %v558_v48 }
 0x528   :  { %1685 = vmatprep.subr.mxu0 %v1935_v0 }
 0x529   :  { %1686 = vmatpush3.msk.msra.mxu0 %vm937_vm15, %v556_v49 }
 0x52a   :  { %1687 = vmatprep.subr.mxu0 %v1935_v0  ;;  %v1022_v62 = vpop.permute.xlu1 %1021 }
 0x52b   :  { %1688 = vmatpush3.msk.msra.mxu0 %vm937_vm15, %v554_v51 }
 0x52c   :  { %1692 = vmatprep.subr.mxu0 %v1935_v0 }
 0x537   :  { %v932_v55 = vpop.xlane.xlu0 %931 }
 0x538   :  { %1771 = vrcp.f32 %v932_v55 }
 0x53b   :  { %v1020_v63 = vpop.permute.xlu0 %1019 }
 0x545   :  { %v1772_v57 = vpop.eup %1771 }
 0x546   :  { %v934_v59 = vmul.f32 %v1772_v57, %v2208_v40 }
 0x548   :  { %1690 = vmatmul.mubr.msk.f32.vlgmr.msra.gmra.mxu0 %vm542_vm5, %v934_v59 }
 0x549   :  { %1693 = vmatpush3.xpose.msk.msra.mxu0 %vm455_vm3, %v1030_v56  ;;  %1702 = vmatprep.mubr.msk.f32.mxu0 %vm1936_vm0, %v1935_v0 }
 0x54a   :  { %1694 = vmatprep.subr.mxu0 %v1935_v0 }
 0x54d   :  { %1695 = vmatpush3.xpose.msk.msra.mxu0 %vm455_vm3, %v1028_v58 }
 0x54e   :  { %1696 = vmatprep.subr.mxu0 %v1935_v0 }
 0x551   :  { %1697 = vmatpush3.xpose.msk.msra.mxu0 %vm455_vm3, %v1026_v60 }
 0x552   :  { %1698 = vmatprep.subr.mxu0 %v1935_v0 }
 0x555   :  { %1699 = vmatpush3.xpose.msk.msra.mxu0 %vm455_vm3, %v1024_v61 }
 0x556   :  { %1700 = vmatprep.subr.mxu0 %v1935_v0 }
 0x559   :  { %1701 = vmatpush3.xpose.msk.msra.mxu0 %vm455_vm3, %v1022_v62 }
 0x55a   :  { %1729 = vmatprep.subr.mxu0 %v1935_v0 }
 0x55c   :  { %1703 = vmatmul.mubr.msk.f32.vlgmr.msra.gmra.mxu0 %vm455_vm3, %v1020_v63 }
 0x55d   :  { %1737 = vmatprep.mubr.msk.f32.mxu0 %vm1936_vm0, %v1935_v0  ;;  %1730 = vmatpush3.msra.mxu0 %v1294_v23 }
 0x55e   :  { %1731 = vmatprep.subr.mxu0 %v1935_v0 }
 0x55f   :  { %1732 = vmatpush3.msra.mxu0 %v1293_v27 }
 0x560   :  { %1733 = vmatprep.subr.mxu0 %v1935_v0 }
 0x561   :  { %1734 = vmatpush3.msra.mxu0 %v1292_v28 }
 0x562   :  { %1735 = vmatprep.subr.mxu0 %v1935_v0 }
 0x563   :  { %1736 = vmatpush3.msra.mxu0 %v1291_v29 }
 0x5d8   :  { %v755_v1 = vpop.f32.mrf.mxu0 }
 0x5da   :  { %v1652_v2 = vpop.f32.mrf.mxu0 }
 0x5e2   :  { %v828_v3 = vpop.f32.mrf.mxu0 }
 0x5e3   :  { %v829_v4 = vadd.f32 %v828_v3, %v755_v1 }
 0x5e4   :  { %v1665_v5 = vpop.f32.mrf.mxu0 }
 0x608   :  { %v1014_v6 = vpop.f32.mrf.mxu0 }
 0x609   :  { %v1018_v7 = vadd.f32 %v1014_v6, %v829_v4 }
 0x60a   :  { %v1691_v8 = vpop.f32.mrf.mxu0 }
 0x61c   :  { %v1109_v9 = vpop.f32.mrf.mxu0 }
 0x61d   :  { %v1113_v10 = vmul.f32 0.35355338, %v1109_v9 }
 0x61e   :  { %v1704_v11 = vpop.f32.mrf.mxu0 }
 0x61f   :  { %v1114_v12 = vadd.f32 %v1113_v10, %v2187_v20  ;;  %v1207_v20 = vld [vmem:[#allocation10 + $0x8] sm:$0xff] }
 0x621   :  { %v1115_v13 = vmul.f32 1.442695, %v1114_v12 }
 0x623   :  { %1773 = vpow2.f32 %v1115_v13 }
 0x630   :  { %v1774_v14 = vpop.eup %1773 }
 0x631   :  { %v1117_v15 = vsel %vm542_vm5, %v1774_v14, 0.0 }
 0x632   :  { %1118 = vadd.xlane.f32.xlu1 %v1117_v15 }
 0x6bb   :  { %v1119_v16 = vpop.xlane.xlu1 %1118 }
 0x6bc   :  { %1775 = vrcp.f32 %v1119_v16 }
 0x6c9   :  { %v1776_v17 = vpop.eup %1775 }
 0x6ca   :  { %v1121_v18 = vmul.f32 %v1776_v17, %v1774_v14 }
 0x6cc   :  { %1716 = vmatmul.mubr.msk.f32.vlgmr.msra.gmra.mxu1 %vm542_vm5, %v1121_v18 }
 0x6cd   :  { %1719 = vmatpush3.msra.mxu1 %v1209_v19  ;;  %1726 = vmatprep.mubr.msk.f32.mxu1 %vm1936_vm0, %v1935_v0 }
 0x6ce   :  { %1720 = vmatprep.subr.mxu1 %v1935_v0 }
 0x6cf   :  { %1721 = vmatpush3.msra.mxu1 %v1208_v21 }
 0x6d0   :  { %1722 = vmatprep.subr.mxu1 %v1935_v0 }
 0x6d1   :  { %1723 = vmatpush3.msra.mxu1 %v1207_v20 }
 0x6d2   :  { %1724 = vmatprep.subr.mxu1 %v1935_v0 }
 0x6d3   :  { %1725 = vmatpush3.msra.mxu1 %v1206_v22 }
 0x78c   :  { %v1201_v24 = vpop.f32.mrf.mxu1 }
 0x78d   :  { %v1205_v25 = vadd.f32 %v1201_v24, %v1018_v7 }
 0x78e   :  { %v1717_v26 = vpop.f32.mrf.mxu1 }
 0x78f   :  { %1727 = vmatmul.mubr.msk.f32.vlgmr.msra.gmra.mxu1 %vm134_vm1, %v1205_v25 }
 0x84f   :  { %v1286_v31 = vpop.f32.mrf.mxu1 }
 0x850   :  { %v1287_v32 = vadd.f32 %v1452_v30, %v1286_v31 }
 0x851   :  { %v1728_v33 = vpop.f32.mrf.mxu1 }
 0x852   :  { %v1290_v34 = vmax.f32 %v1287_v32, 0.0 }
 0x854   :  { %1738 = vmatmul.mubr.msk.f32.vlgmr.msra.gmra.mxu0 %vm134_vm1, %v1290_v34 }
 0x914   :  { %v1371_v36 = vpop.f32.mrf.mxu0 }
 0x915   :  { %v1372_v0 = vadd.f32 %v1454_v35, %v1371_v36 }
 0x916   :  { %v1739_v37 = vpop.f32.mrf.mxu0 }
 0x917   :  { %1375 = vst [vmem:[#allocation13] sm:$0xff] %v1372_v0 }
 0x918   :  { %1908 = shalt.err (!%p1905_p6)
}
 0x919   :  { %1385 = dma.vmem_to_hbm [thread:$0]  %s1383_s28, 128, %s2338_s12, [#allocation4]  }
 0x91a   :  { %1925 = dma.done.wait [#allocation4], 128  }
 0x91b   :  { %1926 = vsyncadd [#allocation4], 4294967168 }
 0x91c   :  { %1389 = vsyncpa [#allocation3], 1 }
 0x91d   :  { %1390 = vsyncpa [#allocation6], 1 }
 0x91e   :  { %1391 = vsyncpa [#allocation9], 1 }
 0x91f   :  { %1392 = vsyncpa [#allocation12], 1 }
 0x920   :  { %1393 = vsyncpa [#allocation4], 1 }

</bundles_post_ra>
